<compile_context>
chip_gen: v5e
topology: v5e:2x2
jax: 0.10.0
libtpu: 0.0.40
codegen_flags: <defaults>
</compile_context>

<pallas_src>
import jax
import jax.numpy as jnp
from jax.experimental import pallas as pl
from jax.experimental.pallas import tpu as pltpu

P_SIZE = 8                     # projection size (p_size)
IN_H = IN_W = 28               # MNIST spatial size
NUM_CLASSES = 10
FLAT_IN = IN_H * IN_W          # 784
FLAT_PROJ = P_SIZE * P_SIZE    # 64
OUT_PAD = FLAT_PROJ            # classes padded to 64 lanes (== P*P here)

# Parameter blob layout (rows x 64 lanes), sublane-aligned sections:
#   rows [0,   64)  : w1^T            (linear_consolidate, [64, 64])
#   rows [64, 128)  : w2^T padded     (linear_interpretate, [64, 64], cols>=10 are 0)
#   row  128        : b1              ([64])
#   row  136        : b2 padded       ([64], entries >= 10 are -1e30 -> exp() == 0)
B1_ROW = 2 * FLAT_PROJ          # 128
B2_ROW = B1_ROW + 8             # 136
BLOB_ROWS = B2_ROW + 8          # 144


def net_kernel(x_ref, proj_ref, blob_ref, out_ref):
    """One batch tile of the forward pass.

    x_ref:    [TB, 784]        flattened input images, bf16 (dropout = identity)
    proj_ref: [784, 64]        folded bilinear SelfProjection weight, bf16
    blob_ref: [144, 64]        packed w1^T / w2^T(padded) / b1 / b2(padded), bf16
    out_ref:  [TB, 64]         log-softmax (valid in the first 10 lanes), f32
    """
    x = x_ref[...]                                                   # bf16

    # SelfProjection (folded bilinear approx) -> [TB, 64] f32, then tanh (f32).
    y = jnp.dot(x, proj_ref[...], preferred_element_type=jnp.float32)
    y = jnp.tanh(y)
    # dropout_projection: identity at inference; flatten(1) already done.

    w1 = blob_ref[0:FLAT_PROJ, :]                                    # [64, 64] bf16
    w2 = blob_ref[FLAT_PROJ:2 * FLAT_PROJ, :]                        # [64, 64] bf16
    b1 = blob_ref[B1_ROW:B1_ROW + 1, :].astype(jnp.float32)          # [1, 64]
    b2 = blob_ref[B2_ROW:B2_ROW + 1, :].astype(jnp.float32)          # [1, 64]

    # linear_consolidate + tanh  (bf16 MXU inputs, f32 accumulation)
    h = jnp.dot(y.astype(jnp.bfloat16), w1,
                preferred_element_type=jnp.float32) + b1
    h = jnp.tanh(h)

    # linear_interpretate (padded lanes get logit ~ -1e30)
    logits = jnp.dot(h.astype(jnp.bfloat16), w2,
                     preferred_element_type=jnp.float32) + b2

    # log_softmax over the class axis, numerically stable (f32).
    # Padded lanes contribute exp(-huge) == 0 to the sum, so the valid lanes
    # are the exact 10-class log-softmax.
    m = jnp.max(logits, axis=1, keepdims=True)
    z = logits - m
    lse = jnp.log(jnp.sum(jnp.exp(z), axis=1, keepdims=True))
    out_ref[...] = z - lse


def init_params(key):
    """Raw (PyTorch-layout) parameters."""
    kL, kR, k1, k2 = jax.random.split(key, 4)
    pL = jax.random.normal(kL, (P_SIZE, IN_H), jnp.float32) * 0.1     # [P, 28]
    pR = jax.random.normal(kR, (IN_W, P_SIZE), jnp.float32) * 0.1     # [28, P]
    w1 = jax.random.normal(k1, (FLAT_PROJ, FLAT_PROJ), jnp.float32) / jnp.sqrt(FLAT_PROJ)
    b1 = jnp.zeros((FLAT_PROJ,), jnp.float32)
    w2 = jax.random.normal(k2, (NUM_CLASSES, FLAT_PROJ), jnp.float32) / jnp.sqrt(FLAT_PROJ)
    b2 = jnp.zeros((NUM_CLASSES,), jnp.float32)
    return pL, pR, w1, b1, w2, b2


def prepare_params(params):
    """One-time weight preparation (fold / transpose / pack / cast). Hoisted
    out of the forward path so it is not re-emitted on every call."""
    pL, pR, w1, b1, w2, b2 = params

    # Fold bilinear SelfProjection (L @ X @ R) into one [784, 64] matmul weight:
    # proj[i*28+j, p*P+q] = L[p, i] * R[j, q]
    proj = jnp.einsum('pi,jq->ijpq', pL, pR).reshape(FLAT_IN, FLAT_PROJ)

    w2t_pad = jnp.zeros((FLAT_PROJ, OUT_PAD), jnp.float32).at[:, :NUM_CLASSES].set(w2.T)
    b2_pad = jnp.full((OUT_PAD,), -1e30, jnp.float32).at[:NUM_CLASSES].set(b2)

    blob = jnp.zeros((BLOB_ROWS, OUT_PAD), jnp.float32)
    blob = blob.at[0:FLAT_PROJ, :].set(w1.T)
    blob = blob.at[FLAT_PROJ:2 * FLAT_PROJ, :].set(w2t_pad)
    blob = blob.at[B1_ROW, :].set(b1)
    blob = blob.at[B2_ROW, :].set(b2_pad)

    # bf16 storage halves the dominant weight DMA; dots still accumulate in f32.
    return proj.astype(jnp.bfloat16), blob.astype(jnp.bfloat16)


def net_forward(x_nchw, prepared):
    """x_nchw: [B, 1, 28, 28] float32 (PyTorch NCHW convention)."""
    proj, blob = prepared

    x = jnp.squeeze(x_nchw, axis=1)                       # [B, 28, 28]
    B = x.shape[0]
    x_flat = x.reshape(B, FLAT_IN).astype(jnp.bfloat16)   # [B, 784] row-major

    # Batch tile: multiple of 8 sublanes; 128 rows to fill MXU rows when B is
    # large.  Pad B up to a multiple of TB (padded rows are sliced off below).
    TB = 128 if B >= 128 else 8 * pl.cdiv(B, 8)
    Bp = TB * pl.cdiv(B, TB)
    if Bp != B:
        x_flat = jnp.pad(x_flat, ((0, Bp - B), (0, 0)))

    out = pl.pallas_call(
        net_kernel,
        grid=(Bp // TB,),
        in_specs=[
            pl.BlockSpec((TB, FLAT_IN), lambda i: (i, 0)),          # x: batch-tiled
            pl.BlockSpec((FLAT_IN, FLAT_PROJ), lambda i: (0, 0)),   # proj: VMEM-resident
            pl.BlockSpec((BLOB_ROWS, OUT_PAD), lambda i: (0, 0)),   # packed params: resident
        ],
        out_specs=pl.BlockSpec((TB, OUT_PAD), lambda i: (i, 0)),
        out_shape=jax.ShapeDtypeStruct((Bp, OUT_PAD), jnp.float32),
        compiler_params=pltpu.CompilerParams(
            dimension_semantics=("parallel",)),
    )(x_flat, proj, blob)

    return out[:B, :NUM_CLASSES]


def _reference_forward(x_nchw, params):
    """Pure-JAX f32 reference for correctness checking."""
    pL, pR, w1, b1, w2, b2 = params
    x = jnp.squeeze(x_nchw, axis=1).astype(jnp.float32)
    y = jnp.einsum('pi,bij,jq->bpq', pL, x, pR).reshape(x.shape[0], FLAT_PROJ)
    y = jnp.tanh(y)
    h = jnp.tanh(y @ w1.T + b1)
    logits = h @ w2.T + b2
    return jax.nn.log_softmax(logits, axis=1)


if __name__ == "__main__":
    key = jax.random.PRNGKey(0)
    k_param, k_data, k_big = jax.random.split(key, 3)

    params = init_params(k_param)
    prepared = prepare_params(params)
    forward = jax.jit(net_forward)

    # Small batch (B=2 -> padded to one TB=8 tile).
    x_small = jax.random.normal(k_data, (2, 1, IN_H, IN_W), jnp.float32)
    out_small = jax.block_until_ready(forward(x_small, prepared))
    assert out_small.shape == (2, NUM_CLASSES)
    assert jnp.allclose(jnp.sum(jnp.exp(out_small), axis=1), 1.0, atol=1e-3)
    ref = _reference_forward(x_small, params)
    assert jnp.allclose(out_small, ref, atol=0.1), "mismatch vs f32 reference"

    # Larger batch exercises the multi-step parallel grid (TB=128, 2 steps).
    x_big = jax.random.normal(k_big, (256, 1, IN_H, IN_W), jnp.float32)
    out_big = jax.block_until_ready(forward(x_big, prepared))
    assert out_big.shape == (256, NUM_CLASSES)
    assert jnp.allclose(jnp.sum(jnp.exp(out_big), axis=1), 1.0, atol=1e-3)

    print("KERNEL_OK")
</pallas_src>

<mosaic_0001>
module attributes {stable_mosaic.version = 11 : i64} {
  func.func @net_kernel(%arg0: i32, %arg1: memref<8x784xbf16, #tpu.memory_space<vmem>>, %arg2: memref<784x64xbf16, #tpu.memory_space<vmem>>, %arg3: memref<144x64xbf16, #tpu.memory_space<vmem>>, %arg4: memref<8x64xf32, #tpu.memory_space<vmem>>) attributes {dimension_semantics = [#tpu.dimension_semantics<parallel>], iteration_bounds = array<i64: 1>, scalar_prefetch = 0 : i64, scratch_operands = 0 : i64, tpu.core_type = #tpu.core_type<tc>, window_params = [{transform_indices = @transform_0, window_bounds = array<i64: 8, 784>}, {pipeline_mode = #tpu.pipeline_mode<synchronous>, transform_indices = @transform_1, window_bounds = array<i64: 784, 64>}, {pipeline_mode = #tpu.pipeline_mode<synchronous>, transform_indices = @transform_2, window_bounds = array<i64: 144, 64>}, {transform_indices = @transform_3, window_bounds = array<i64: 8, 64>}]} {
    %c0 = arith.constant 0 : index
    %c0_0 = arith.constant 0 : index
    %0 = vector.load %arg1[%c0, %c0_0] : memref<8x784xbf16, #tpu.memory_space<vmem>>, vector<8x784xbf16>
    %c0_1 = arith.constant 0 : index
    %c0_2 = arith.constant 0 : index
    %1 = vector.load %arg2[%c0_1, %c0_2] : memref<784x64xbf16, #tpu.memory_space<vmem>>, vector<784x64xbf16>
    %cst = arith.constant dense<0.000000e+00> : vector<8x64xf32>
    %2 = tpu.matmul %0, %1, %cst {dimension_numbers = #tpu.dot_dimension_numbers<[1], [0], [0], [1], [0, 0, 1, 1], [], []>} : vector<8x784xbf16>, vector<784x64xbf16>, vector<8x64xf32> -> vector<8x64xf32>
    %3 = math.tanh %2 : vector<8x64xf32>
    %c0_3 = arith.constant 0 : index
    %c0_4 = arith.constant 0 : index
    %4 = vector.load %arg3[%c0_3, %c0_4] : memref<144x64xbf16, #tpu.memory_space<vmem>>, vector<64x64xbf16>
    %c64 = arith.constant 64 : index
    %c0_5 = arith.constant 0 : index
    %5 = vector.load %arg3[%c64, %c0_5] : memref<144x64xbf16, #tpu.memory_space<vmem>>, vector<64x64xbf16>
    %c128 = arith.constant 128 : index
    %c0_6 = arith.constant 0 : index
    %6 = vector.load %arg3[%c128, %c0_6] : memref<144x64xbf16, #tpu.memory_space<vmem>>, vector<1x64xbf16>
    %7 = arith.extf %6 : vector<1x64xbf16> to vector<1x64xf32>
    %c136 = arith.constant 136 : index
    %c0_7 = arith.constant 0 : index
    %8 = vector.load %arg3[%c136, %c0_7] : memref<144x64xbf16, #tpu.memory_space<vmem>>, vector<1x64xbf16>
    %9 = arith.extf %8 : vector<1x64xbf16> to vector<1x64xf32>
    %10 = arith.truncf %3 : vector<8x64xf32> to vector<8x64xbf16>
    %cst_8 = arith.constant dense<0.000000e+00> : vector<8x64xf32>
    %11 = tpu.matmul %10, %4, %cst_8 {dimension_numbers = #tpu.dot_dimension_numbers<[1], [0], [0], [1], [0, 0, 1, 1], [], []>} : vector<8x64xbf16>, vector<64x64xbf16>, vector<8x64xf32> -> vector<8x64xf32>
    %12 = vector.broadcast %7 : vector<1x64xf32> to vector<8x64xf32>
    %13 = arith.addf %11, %12 : vector<8x64xf32>
    %14 = math.tanh %13 : vector<8x64xf32>
    %15 = arith.truncf %14 : vector<8x64xf32> to vector<8x64xbf16>
    %cst_9 = arith.constant dense<0.000000e+00> : vector<8x64xf32>
    %16 = tpu.matmul %15, %5, %cst_9 {dimension_numbers = #tpu.dot_dimension_numbers<[1], [0], [0], [1], [0, 0, 1, 1], [], []>} : vector<8x64xbf16>, vector<64x64xbf16>, vector<8x64xf32> -> vector<8x64xf32>
    %17 = vector.broadcast %9 : vector<1x64xf32> to vector<8x64xf32>
    %18 = arith.addf %16, %17 : vector<8x64xf32>
    %cst_10 = arith.constant dense<0xFF800000> : vector<8xf32>
    %19 = vector.multi_reduction <maximumf>, %18, %cst_10 [1] : vector<8x64xf32> to vector<8xf32>
    %20 = vector.shape_cast %19 : vector<8xf32> to vector<8x1xf32>
    %21 = vector.broadcast %20 : vector<8x1xf32> to vector<8x64xf32>
    %22 = arith.subf %18, %21 : vector<8x64xf32>
    %23 = math.exp %22 : vector<8x64xf32>
    %cst_11 = arith.constant dense<0.000000e+00> : vector<8xf32>
    %24 = vector.multi_reduction <add>, %23, %cst_11 [1] : vector<8x64xf32> to vector<8xf32>
    %25 = vector.shape_cast %24 : vector<8xf32> to vector<8x1xf32>
    %26 = math.log %25 : vector<8x1xf32>
    %27 = vector.broadcast %26 : vector<8x1xf32> to vector<8x64xf32>
    %28 = arith.subf %22, %27 : vector<8x64xf32>
    %c0_12 = arith.constant 0 : index
    %c0_13 = arith.constant 0 : index
    %29 = vector.load %arg4[%c0_12, %c0_13] : memref<8x64xf32, #tpu.memory_space<vmem>>, vector<8x64xf32>
    tpu.vector_store %arg4[%c0_12, %c0_13], %28 {strides = array<i32>} : memref<8x64xf32, #tpu.memory_space<vmem>>, vector<8x64xf32>,
    return
  }
  func.func @transform_0(%arg0: i32) -> (i32, i32) {
    %c0_i32 = arith.constant 0 : i32
    %c0_i32_0 = arith.constant 0 : i32
    return %arg0, %c0_i32 : i32, i32
  }
  func.func @transform_1(%arg0: i32) -> (i32, i32) {
    %c0_i32 = arith.constant 0 : i32
    %c0_i32_0 = arith.constant 0 : i32
    %c0_i32_1 = arith.constant 0 : i32
    return %c0_i32, %c0_i32_0 : i32, i32
  }
  func.func @transform_2(%arg0: i32) -> (i32, i32) {
    %c0_i32 = arith.constant 0 : i32
    %c0_i32_0 = arith.constant 0 : i32
    %c0_i32_1 = arith.constant 0 : i32
    return %c0_i32, %c0_i32_0 : i32, i32
  }
  func.func @transform_3(%arg0: i32) -> (i32, i32) {
    %c0_i32 = arith.constant 0 : i32
    %c0_i32_0 = arith.constant 0 : i32
    return %arg0, %c0_i32 : i32, i32
  }
}

</mosaic_0001>

<bundles_post_ra>
// kernel: net_forward.1
= control target key start
LH: loop header
LB: loop body
LE: loop exit
PB: predicated region body
PF: predicated region fallthrough
CT: control target
= control target key end

     0   :  { %vm435_vm0 = vcmask 130048   ;;  %vm577_vm1 = vcmask 523264   ;;  %s1167_s1 = inlined_call_operand.vmem [shape: bf16[784,64], index: 1, kind: input, shape index: {}]   ;;  %s1168_s0 = inlined_call_operand.vmem [shape: bf16[8,784], index: 0, kind: input, shape index: {}]   ;;  %s1169_s2 = inlined_call_operand.vmem [shape: bf16[144,64], index: 2, kind: input, shape index: {}]   ;;  %s1170_s3 = inlined_call_operand.vmem [shape: f32[8,64], index: 3, kind: output, shape index: {}]  }
   0x1   :  { %v892_v0 = vld [vmem:[%s1167_s1 + $0x38] sm:$0xff]  ;;  %v891_v3 = vld [vmem:[%s1167_s1 + $0x30] sm:$0xff]  ;;  %v890_v8 = vld [vmem:[%s1167_s1 + $0x28] sm:$0xff] }
   0x2   :  { %v900_v1 = vld [vmem:[%s1167_s1 + $0x78] sm:$0xff]  ;;  %439 = vmatpush.bf16.msra.mxu0 %v892_v0  ;;  %v899_v4 = vld [vmem:[%s1167_s1 + $0x70] sm:$0xff]  ;;  %v898_v9 = vld [vmem:[%s1167_s1 + $0x68] sm:$0xff] }
   0x3   :  { %v908_v2 = vld [vmem:[%s1167_s1 + $0xb8] sm:$0xff]  ;;  %452 = vmatpush.bf16.msra.mxu1 %v900_v1  ;;  %v907_v5 = vld [vmem:[%s1167_s1 + $0xb0] sm:$0xff]  ;;  %v906_v10 = vld [vmem:[%s1167_s1 + $0xa8] sm:$0xff] }
   0x4   :  { %465 = vmatpush.bf16.msra.mxu2 %v908_v2  ;;  %v916_v6 = vld [vmem:[%s1167_s1 + $0xf8] sm:$0xff]  ;;  %v915_v7 = vld [vmem:[%s1167_s1 + $0xf0] sm:$0xff]  ;;  %v914_v11 = vld [vmem:[%s1167_s1 + $0xe8] sm:$0xff] }
   0x5   :  { %478 = vmatpush.bf16.msra.mxu3 %v916_v6  ;;  %v889_v12 = vld [vmem:[%s1167_s1 + $0x20] sm:$0xff]  ;;  %v888_v16 = vld [vmem:[%s1167_s1 + $0x18] sm:$0xff]  ;;  %v887_v20 = vld [vmem:[%s1167_s1 + $0x10] sm:$0xff] }
   0x6   :  { %440 = vmatpush.bf16.msra.mxu0 %v891_v3  ;;  %v897_v13 = vld [vmem:[%s1167_s1 + $0x60] sm:$0xff]  ;;  %v896_v17 = vld [vmem:[%s1167_s1 + $0x58] sm:$0xff]  ;;  %v895_v21 = vld [vmem:[%s1167_s1 + $0x50] sm:$0xff] }
   0x7   :  { %453 = vmatpush.bf16.msra.mxu1 %v899_v4  ;;  %v905_v14 = vld [vmem:[%s1167_s1 + $0xa0] sm:$0xff]  ;;  %v904_v18 = vld [vmem:[%s1167_s1 + $0x98] sm:$0xff]  ;;  %v903_v22 = vld [vmem:[%s1167_s1 + $0x90] sm:$0xff] }
   0x8   :  { %466 = vmatpush.bf16.msra.mxu2 %v907_v5  ;;  %v913_v15 = vld [vmem:[%s1167_s1 + $0xe0] sm:$0xff]  ;;  %v912_v19 = vld [vmem:[%s1167_s1 + $0xd8] sm:$0xff]  ;;  %v911_v23 = vld [vmem:[%s1167_s1 + $0xd0] sm:$0xff] }
   0x9   :  { %479 = vmatpush.bf16.msra.mxu3 %v915_v7  ;;  %v886_v24 = vld [vmem:[%s1167_s1 + $0x8] sm:$0xff]  ;;  %v15_v26 = vld [vmem:[%s1168_s0] sm:$0xff]  ;;  %v924_v34 = vld [vmem:[%s1167_s1 + $0x138] sm:$0xff] }
   0xa   :  { %441 = vmatpush.bf16.msra.mxu0 %v890_v8  ;;  %v894_v25 = vld [vmem:[%s1167_s1 + $0x48] sm:$0xff]  ;;  %v121_v30 = vunpack.c.l.b16 %v15_v26  ;;  %v122_v31 = vunpack.c.h.b16 %v15_v26  ;;  %v885_v32 = vld [vmem:[%s1167_s1] sm:$0xff]  ;;  %v932_v35 = vld [vmem:[%s1167_s1 + $0x178] sm:$0xff] }
   0xb   :  { %454 = vmatpush.bf16.msra.mxu1 %v898_v9  ;;  %v902_v27 = vld [vmem:[%s1167_s1 + $0x88] sm:$0xff]  ;;  %v893_v33 = vld [vmem:[%s1167_s1 + $0x40] sm:$0xff]  ;;  %v923_v43 = vld [vmem:[%s1167_s1 + $0x130] sm:$0xff] }
   0xc   :  { %467 = vmatpush.bf16.msra.mxu2 %v906_v10  ;;  %v16_v28 = vld [vmem:[%s1168_s0 + $0x8] sm:$0xff]  ;;  %v901_v36 = vld [vmem:[%s1167_s1 + $0x80] sm:$0xff]  ;;  %v128_v38 = vpack.c.b16 %v121_v30, %v121_v30  ;;  %v129_v39 = vpack.c.b16 %v122_v31, %v122_v31  ;;  %v931_v44 = vld [vmem:[%s1167_s1 + $0x170] sm:$0xff] }
   0xd   :  { %480 = vmatpush.bf16.msra.mxu3 %v914_v11  ;;  %v910_v29 = vld [vmem:[%s1167_s1 + $0xc8] sm:$0xff]  ;;  %v123_v37 = vunpack.c.l.b16 %v16_v28  ;;  %v124_v40 = vunpack.c.h.b16 %v16_v28  ;;  %v909_v41 = vld [vmem:[%s1167_s1 + $0xc0] sm:$0xff]  ;;  %v18_v51 = vld [vmem:[%s1168_s0 + $0x18] sm:$0xf] }
   0xe   :  { %442 = vmatpush.bf16.msra.mxu0 %v889_v12  ;;  %v933_v42 = vld [vmem:[%s1167_s1 + $0x180] sm:$0xff]  ;;  %v922_v47 = vld [vmem:[%s1167_s1 + $0x128] sm:$0xff]  ;;  %v920_v52 = vld [vmem:[%s1167_s1 + $0x118] sm:$0xff]  ;;  %v127_v54 = vunpack.c.l.b16 %v18_v51 }
   0xf   :  { %455 = vmatpush.bf16.msra.mxu1 %v897_v13  ;;  %v130_v45 = vpack.c.b16 %v123_v37, %v123_v37  ;;  %v131_v46 = vpack.c.b16 %v124_v40, %v124_v40  ;;  %v930_v48 = vld [vmem:[%s1167_s1 + $0x168] sm:$0xff]  ;;  %v921_v49 = vld [vmem:[%s1167_s1 + $0x120] sm:$0xff]  ;;  %v928_v53 = vld [vmem:[%s1167_s1 + $0x158] sm:$0xff] }
  0x10   :  { %468 = vmatpush.bf16.msra.mxu2 %v905_v14  ;;  %v929_v50 = vld [vmem:[%s1167_s1 + $0x160] sm:$0xff]  ;;  %v919_v55 = vld [vmem:[%s1167_s1 + $0x110] sm:$0xff]  ;;  %v134_v57 = vpack.c.b16 %v127_v54, %v127_v54  ;;  %v918_v58 = vld [vmem:[%s1167_s1 + $0x108] sm:$0xff] }
  0x11   :  { %481 = vmatpush.bf16.msra.mxu3 %v913_v15  ;;  %v927_v56 = vld [vmem:[%s1167_s1 + $0x150] sm:$0xff]  ;;  %v926_v59 = vld [vmem:[%s1167_s1 + $0x148] sm:$0xff]  ;;  %v917_v63 = vld [vmem:[%s1167_s1 + $0x100] sm:$0xff] }
  0x12   :  { %443 = vmatpush.bf16.msra.mxu0 %v888_v16  ;;  %v17_v60 = vld [vmem:[%s1168_s0 + $0x10] sm:$0xff]  ;;  %v925_v0 = vld [vmem:[%s1167_s1 + $0x140] sm:$0xff]  ;;  %v937_v3 = vld [vmem:[%s1169_s2 + $0x18] sm:$0xff] }
  0x13   :  { %456 = vmatpush.bf16.msra.mxu1 %v896_v17  ;;  %v125_v61 = vunpack.c.l.b16 %v17_v60  ;;  %v126_v62 = vunpack.c.h.b16 %v17_v60  ;;  %v936_v6 = vld [vmem:[%s1169_s2 + $0x10] sm:$0xff]  ;;  %v935_v7 = vld [vmem:[%s1169_s2 + $0x8] sm:$0xff]  ;;  %v934_v10 = vld [vmem:[%s1169_s2] sm:$0xff] }
  0x14   :  { %469 = vmatpush.bf16.msra.mxu2 %v904_v18  ;;  %v941_v13 = vld [vmem:[%s1169_s2 + $0x38] sm:$0xff]  ;;  %v940_v30 = vld [vmem:[%s1169_s2 + $0x30] sm:$0xff]  ;;  %v939_v31 = vld [vmem:[%s1169_s2 + $0x28] sm:$0xff] }
  0x15   :  { %482 = vmatpush.bf16.msra.mxu3 %v912_v19  ;;  %v132_v1 = vpack.c.b16 %v125_v61, %v125_v61  ;;  %v133_v2 = vpack.c.b16 %v126_v62, %v126_v62 }
  0x16   :  { %444 = vmatpush.bf16.msra.mxu0 %v887_v20 }
  0x17   :  { %457 = vmatpush.bf16.msra.mxu1 %v895_v21 }
  0x18   :  { %470 = vmatpush.bf16.msra.mxu2 %v903_v22 }
  0x19   :  { %483 = vmatpush.bf16.msra.mxu3 %v911_v23 }
  0x1a   :  { %445 = vmatpush.bf16.msra.mxu0 %v886_v24 }
  0x1b   :  { %458 = vmatpush.bf16.msra.mxu1 %v894_v25 }
  0x1c   :  { %471 = vmatpush.bf16.msra.mxu2 %v902_v27 }
  0x1d   :  { %484 = vmatpush.bf16.msra.mxu3 %v910_v29 }
  0x1e   :  { %446 = vmatpush.bf16.msra.mxu0 %v885_v32  ;;  %v938_v32 = vld [vmem:[%s1169_s2 + $0x20] sm:$0xff] }
  0x1f   :  { %459 = vmatpush.bf16.msra.mxu1 %v893_v33  ;;  %v547_v33 = vld [vmem:[%s1169_s2 + $0x40] sm:$0x1] }
  0x20   :  { %472 = vmatpush.bf16.msra.mxu2 %v901_v36 }
  0x21   :  { %447 = vmatmul.bf16.vlgmr.msra.gmra.mxu0 %v128_v38  ;;  %485 = vmatpush.bf16.msra.mxu3 %v909_v41  ;;  %v549_v41 = vld [vmem:[%s1169_s2 + $0x44] sm:$0x1] }
  0x22   :  { %491 = vmatpush.bf16.msrb.mxu0 %v924_v34  ;;  %460 = vmatmul.bf16.vlgmr.msra.gmra.mxu1 %v129_v39  ;;  %v548_v34 = vunpack.c.l.bf16 %v547_v33 }
  0x23   :  { %504 = vmatpush.bf16.msrb.mxu1 %v932_v35  ;;  %473 = vmatmul.bf16.vlgmr.msra.gmra.mxu2 %v130_v45 }
  0x24   :  { %524 = vmatpush.bf16.msrb.mxu2 %v933_v42  ;;  %486 = vmatmul.bf16.vlgmr.msra.gmra.mxu3 %v131_v46  ;;  %v552_v35 = vperm.slane %v548_v34, 0  ;;  %v550_v42 = vunpack.c.l.bf16 %v549_v41 }
  0x25   :  { %585 = vmatpush.bf16.msrb.mxu3 %v937_v3 }
  0x26   :  { %492 = vmatpush.bf16.msrb.mxu0 %v923_v43  ;;  %v596_v43 = vperm.slane %v550_v42, 0 }
  0x27   :  { %505 = vmatpush.bf16.msrb.mxu1 %v931_v44 }
  0x28   :  { %628 = vmatpush.bf16.msra.mxu2 %v941_v13 }
  0x29   :  { %586 = vmatpush.bf16.msrb.mxu3 %v936_v6 }
  0x2a   :  { %493 = vmatpush.bf16.msrb.mxu0 %v922_v47 }
  0x2b   :  { %506 = vmatpush.bf16.msrb.mxu1 %v930_v48 }
  0x2c   :  { %629 = vmatpush.bf16.msra.mxu2 %v940_v30 }
  0x2d   :  { %587 = vmatpush.bf16.msrb.mxu3 %v935_v7 }
  0x2e   :  { %494 = vmatpush.bf16.msrb.mxu0 %v921_v49 }
  0x2f   :  { %507 = vmatpush.bf16.msrb.mxu1 %v929_v50 }
  0x30   :  { %630 = vmatpush.bf16.msra.mxu2 %v939_v31 }
  0x31   :  { %588 = vmatpush.bf16.msrb.mxu3 %v934_v10 }
  0x32   :  { %495 = vmatpush.bf16.msrb.mxu0 %v920_v52 }
  0x33   :  { %508 = vmatpush.bf16.msrb.mxu1 %v928_v53  ;;  %850 = vmatmul.msk.bf16.vlgmr.msrb.gmra.mxu2 %vm435_vm0, %v134_v57 }
  0x34   :  { %631 = vmatpush.bf16.msra.mxu2 %v938_v32 }
  0x36   :  { %496 = vmatpush.bf16.msrb.mxu0 %v919_v55 }
  0x37   :  { %509 = vmatpush.bf16.msrb.mxu1 %v927_v56 }
  0x3a   :  { %497 = vmatpush.bf16.msrb.mxu0 %v918_v58 }
  0x3b   :  { %510 = vmatpush.bf16.msrb.mxu1 %v926_v59 }
  0x3e   :  { %498 = vmatpush.bf16.msrb.mxu0 %v917_v63 }
  0x3f   :  { %511 = vmatpush.bf16.msrb.mxu1 %v925_v0 }
  0x41   :  { %499 = vmatmul.bf16.vlgmr.msrb.gmra.mxu0 %v132_v1 }
  0x42   :  { %512 = vmatmul.bf16.vlgmr.msrb.gmra.mxu1 %v133_v2 }
  0x9e   :  { %v448_v4 = vpop.f32.mrf.mxu0 }
  0x9f   :  { %v461_v5 = vpop.f32.mrf.mxu1 }
  0xa0   :  { %v462_v16 = vadd.f32 %v461_v5, %v448_v4 }
  0xa6   :  { %v450_v8 = vpop.f32.mrf.mxu0  ;;  %v474_v11 = vpop.f32.mrf.mxu2 }
  0xa7   :  { %v463_v9 = vpop.f32.mrf.mxu1  ;;  %v487_v12 = vpop.f32.mrf.mxu3  ;;  %v475_v17 = vadd.f32 %v474_v11, %v462_v16 }
  0xa9   :  { %v488_v19 = vadd.f32 %v487_v12, %v475_v17 }
  0xae   :  { %v476_v14 = vpop.f32.mrf.mxu2 }
  0xaf   :  { %v489_v15 = vpop.f32.mrf.mxu3 }
  0xb6   :  { %v526_v18 = vpop.f32.mrf.mxu2 }
  0xbe   :  { %v500_v20 = vpop.f32.mrf.mxu0  ;;  %v528_v24 = vpop.f32.mrf.mxu2 }
  0xbf   :  { %v513_v21 = vpop.f32.mrf.mxu1  ;;  %v501_v22 = vadd.f32 %v500_v20, %v488_v19 }
  0xc1   :  { %v514_v23 = vadd.f32 %v513_v21, %v501_v22 }
  0xc3   :  { %v527_v25 = vadd.f32 %v526_v18, %v514_v23 }
  0xc5   :  { %942 = vtanh.f32 %v527_v25 }
  0xc6   :  { %v502_v26 = vpop.f32.mrf.mxu0 }
  0xc7   :  { %v515_v27 = vpop.f32.mrf.mxu1 }
  0xcb   :  { %v943_v28 = vpop.eup %942 }
  0xcc   :  { %v551_v29 = vpack.c.bf16 %v943_v28, %v943_v28 }
  0xce   :  { %867 = vmatmul.msk.bf16.vlgmr.msrb.gmra.mxu3 %vm577_vm1, %v551_v29 }
 0x151   :  { %v590_v36 = vpop.f32.mrf.mxu3 }
 0x152   :  { %v591_v37 = vadd.f32 %v590_v36, %v552_v35 }
 0x154   :  { %944 = vtanh.f32 %v591_v37 }
 0x159   :  { %v592_v38 = vpop.f32.mrf.mxu3 }
 0x15a   :  { %v945_v39 = vpop.eup %944 }
 0x15b   :  { %v595_v40 = vpack.c.bf16 %v945_v39, %v945_v39 }
 0x15d   :  { %884 = vmatmul.msk.bf16.vlgmr.msra.gmra.mxu2 %vm577_vm1, %v595_v40 }
 0x1e0   :  { %v633_v44 = vpop.f32.mrf.mxu2 }
 0x1e1   :  { %v634_v45 = vadd.f32 %v633_v44, %v596_v43 }
 0x1e3   :  { %v637_v46 = vsel %vm577_vm1, %v634_v45, -inf }
 0x1e4   :  { %638 = vmax.xlane.f32.xlu0 %v637_v46 }
 0x1e8   :  { %v635_v47 = vpop.f32.mrf.mxu2 }
 0x257   :  { %v639_v48 = vpop.xlane.xlu0 %638 }
 0x258   :  { %v640_v49 = vsub.f32 %v634_v45, %v639_v48 }
 0x25a   :  { %v641_v50 = vmul.f32 1.442695, %v640_v49 }
 0x25c   :  { %946 = vpow2.f32 %v641_v50 }
 0x262   :  { %v947_v51 = vpop.eup %946 }
 0x263   :  { %v643_v52 = vsel %vm577_vm1, %v947_v51, 0.0 }
 0x264   :  { %644 = vadd.xlane.f32.xlu0 %v643_v52 }
 0x2d7   :  { %v645_v53 = vpop.xlane.xlu0 %644 }
 0x2d8   :  { %948 = vlog2.f32 %v645_v53 }
 0x2de   :  { %v949_v54 = vpop.eup %948 }
 0x2df   :  { %v647_v55 = vmul.f32 0.6931472, %v949_v54 }
 0x2e1   :  { %v648_v56 = vsub.f32 %v640_v49, %v647_v55 }
 0x2e3   :  { %649 = vst.msk [vmem:[%s1170_s3] sm:$0xff] %vm577_vm1, %v648_v56 }

</bundles_post_ra>
